<compile_context>
chip_gen: v7x
topology: tpu7x:2x2x1
jax: 0.10.0
libtpu: 0.0.40
codegen_flags: <defaults>
</compile_context>

<pallas_src>
import jax
import jax.numpy as jnp
from jax.experimental import pallas as pl
from jax.experimental.pallas import tpu as pltpu

LANES = 128
_MAX_TILE_ROWS = 4096
_VMEM_BUDGET = 24 * 1024 * 1024      # headroom under the 32 MiB scoped limit (v7x-safe)


def _choose_row_tiling(R, K, B):
    """Pick (R_pad, tile_rows) for a lane-dense (rows, 128) layout.

    tile_rows is either the full row count (always layout-legal) or a
    multiple-of-8 divisor of it, sized to fill the VMEM budget.
    """
    bytes_per_row = (K + 2) * LANES * 4 * 2      # pv + x + y blocks, double-buffered
    cap = max(8, min(_MAX_TILE_ROWS, _VMEM_BUDGET // bytes_per_row))
    # v7x has 2 TensorCores: keep at least 2 grid steps on the parallel axes.
    if B == 1 and R >= 16:
        cap = min(cap, max(8, (R // 2 // 8) * 8))
    if R <= cap:
        return R, R                              # full-dim row block: always legal
    # Largest multiple-of-8 divisor of R that fits -> no padding at all.
    t = (cap // 8) * 8
    while t >= 8:
        if R % t == 0:
            return R, t
        t -= 8
    # Rare fallback (R has no multiple-of-8 divisor <= cap): pad rows up to a
    # tile multiple.  This costs one copy of the padded arrays.
    t = (cap // 8) * 8
    return ((R + t - 1) // t) * t, t


def _weighted_l1_kernel(x_ref, y_ref, pv_ref, out_ref):
    """One (batch b, row-tile i) grid step.

    x_ref, y_ref : (tile_rows, 128)     -- read exactly once (no K grid axis)
    pv_ref       : (K, tile_rows, 128)  -- native layout, K on a block axis
    out_ref      : (tile_rows, 1)       -- per-row partial sums
    """
    # w = sum_k pv[k]: leading-axis reduce = full-width VPU adds, no relayout.
    w = pv_ref[0].astype(jnp.float32)
    for k in range(1, pv_ref.shape[0]):          # static, unrolled at trace time
        w = w + pv_ref[k].astype(jnp.float32)
    diff = jnp.abs(x_ref[...].astype(jnp.float32) - y_ref[...].astype(jnp.float32))
    # Cross-lane reduce runs on the XLU (a free slot in this HBM-bound kernel);
    # only ~N/128 elements go back to HBM.
    out_ref[...] = jnp.sum(diff * w, axis=1, keepdims=True)


def _weighted_l1_sum(x, y, pv_bk):
    """sum(|x - y| * sum_k pv_bk[:, k]) with x, y: (B, *sp), pv_bk: (B, K, *sp)."""
    B = x.shape[0]
    K = pv_bk.shape[1]
    n_sp = int(x.size) // B                      # flattened spatial size per batch

    xf = x.reshape(B, n_sp)
    yf = y.reshape(B, n_sp)
    pvf = pv_bk.reshape(B, K, n_sp)

    R = (n_sp + LANES - 1) // LANES
    R_pad, tile_rows = _choose_row_tiling(R, K, B)
    n_pad = R_pad * LANES

    if n_pad != n_sp:
        # Zero padding is exact for this loss (|0-0| * 0 == 0).  Taken only when
        # the flattened spatial size is not a multiple of 128 (or the rare
        # no-divisor fallback); it copies the arrays once.
        pad = n_pad - n_sp
        xf = jnp.pad(xf, ((0, 0), (0, pad)))
        yf = jnp.pad(yf, ((0, 0), (0, pad)))
        pvf = jnp.pad(pvf, ((0, 0), (0, 0), (0, pad)))

    # Contiguous (no-copy) reshapes into lane-dense (rows, 128) slabs.
    x3 = xf.reshape(B, R_pad, LANES)
    y3 = yf.reshape(B, R_pad, LANES)
    pv4 = pvf.reshape(B, K, R_pad, LANES)

    num_tiles = R_pad // tile_rows

    partials = pl.pallas_call(
        _weighted_l1_kernel,
        out_shape=jax.ShapeDtypeStruct((B, R_pad, 1), jnp.float32),
        grid_spec=pltpu.PrefetchScalarGridSpec(
            num_scalar_prefetch=0,
            grid=(B, num_tiles),
            in_specs=[
                pl.BlockSpec((pl.Squeezed(), tile_rows, LANES),
                             lambda b, i: (b, i, 0)),
                pl.BlockSpec((pl.Squeezed(), tile_rows, LANES),
                             lambda b, i: (b, i, 0)),
                # pv stays in native (B, K, rows, 128) order; K is a full-dim
                # block axis so no transpose and no K grid axis are needed.
                pl.BlockSpec((pl.Squeezed(), K, tile_rows, LANES),
                             lambda b, i: (b, 0, i, 0)),
            ],
            out_specs=pl.BlockSpec((pl.Squeezed(), tile_rows, 1),
                                   lambda b, i: (b, i, 0)),
        ),
        compiler_params=pltpu.CompilerParams(
            # Every grid step writes its own output block -> both axes are
            # independent and can shard across the two v7x TensorCores.
            dimension_semantics=("parallel", "parallel"),
            vmem_limit_bytes=32 * 1024 * 1024,
        ),
    )(x3, y3, pv4)

    return jnp.sum(partials)                     # tiny (B * R_pad) final reduce


def l1_loss(x, y, pv):
    """Pallas implementation of L1_Loss.forward."""
    if pv.ndim > 4:
        pv_bk = jnp.squeeze(pv, axis=0)          # (B, K, H, W) -- view, no copy
        return _weighted_l1_sum(x, y, pv_bk)
    else:
        # TODO(synk): reference code calls y.shape(0) (a call on torch.Size),
        # which raises at runtime in PyTorch; we interpret the normalization
        # as y.shape[0] * y.shape[1] * y.shape[2].
        if pv.shape != x.shape:
            # TODO(synk): broadcast inside the kernel (stride-0 / smaller block)
            # instead of materializing; only hit when pv is lower-rank than x.
            pv = jnp.broadcast_to(pv, x.shape)
        pv_bk = pv.reshape((x.shape[0], 1) + tuple(x.shape[1:]))   # K = 1 fast path
        s = _weighted_l1_sum(x, y, pv_bk)
        denom = float(y.shape[0] * y.shape[1] * y.shape[2])
        return s / denom


if __name__ == "__main__":
    key = jax.random.PRNGKey(0)
    kx, ky, kp = jax.random.split(key, 3)

    B, K, H, W = 2, 4, 16, 16
    x = jax.random.normal(kx, (B, H, W), dtype=jnp.float32)
    y = jax.random.normal(ky, (B, H, W), dtype=jnp.float32)
    pv = jax.random.uniform(kp, (1, B, K, H, W), dtype=jnp.float32)

    # pv.ndim > 4 branch
    loss = jax.block_until_ready(l1_loss(x, y, pv))
    pv4 = jnp.squeeze(pv, axis=0)
    ref = jnp.sum(jnp.abs(x - y)[:, None, :, :] * pv4)
    assert jnp.allclose(loss, ref, rtol=1e-5, atol=1e-5), (float(loss), float(ref))

    # pv.ndim <= 4 branch
    pv3 = jax.random.uniform(kp, (B, H, W), dtype=jnp.float32)
    loss3 = jax.block_until_ready(l1_loss(x, y, pv3))
    ref3 = jnp.sum(jnp.abs(x - y) * pv3) / float(B * H * W)
    assert jnp.allclose(loss3, ref3, rtol=1e-5, atol=1e-5), (float(loss3), float(ref3))

    print("KERNEL_OK")
</pallas_src>

<mosaic_0001>
module attributes {stable_mosaic.version = 11 : i64} {
  func.func @_weighted_l1_kernel(%arg0: i32, %arg1: i32, %arg2: memref<1x2x128xf32, #tpu.memory_space<vmem>>, %arg3: memref<1x2x128xf32, #tpu.memory_space<vmem>>, %arg4: memref<1x4x2x128xf32, #tpu.memory_space<vmem>>, %arg5: memref<1x2x1xf32, #tpu.memory_space<vmem>>) attributes {dimension_semantics = [#tpu.dimension_semantics<parallel>, #tpu.dimension_semantics<parallel>], iteration_bounds = array<i64: 2, 1>, scalar_prefetch = 0 : i64, scratch_operands = 0 : i64, tpu.core_type = #tpu.core_type<tc>, window_params = [{transform_indices = @transform_0, window_bounds = array<i64: 1, 2, 128>}, {transform_indices = @transform_1, window_bounds = array<i64: 1, 2, 128>}, {transform_indices = @transform_2, window_bounds = array<i64: 1, 4, 2, 128>}, {transform_indices = @transform_3, window_bounds = array<i64: 1, 2, 1>}]} {
    %c0 = arith.constant 0 : index
    %c0_0 = arith.constant 0 : index
    %c0_1 = arith.constant 0 : index
    %c0_2 = arith.constant 0 : index
    %0 = vector.load %arg4[%c0, %c0_0, %c0_1, %c0_2] : memref<1x4x2x128xf32, #tpu.memory_space<vmem>>, vector<1x1x2x128xf32>
    %1 = vector.shape_cast %0 : vector<1x1x2x128xf32> to vector<2x128xf32>
    %c0_3 = arith.constant 0 : index
    %c1 = arith.constant 1 : index
    %c0_4 = arith.constant 0 : index
    %c0_5 = arith.constant 0 : index
    %2 = vector.load %arg4[%c0_3, %c1, %c0_4, %c0_5] : memref<1x4x2x128xf32, #tpu.memory_space<vmem>>, vector<1x1x2x128xf32>
    %3 = vector.shape_cast %2 : vector<1x1x2x128xf32> to vector<2x128xf32>
    %4 = arith.addf %1, %3 : vector<2x128xf32>
    %c0_6 = arith.constant 0 : index
    %c2 = arith.constant 2 : index
    %c0_7 = arith.constant 0 : index
    %c0_8 = arith.constant 0 : index
    %5 = vector.load %arg4[%c0_6, %c2, %c0_7, %c0_8] : memref<1x4x2x128xf32, #tpu.memory_space<vmem>>, vector<1x1x2x128xf32>
    %6 = vector.shape_cast %5 : vector<1x1x2x128xf32> to vector<2x128xf32>
    %7 = arith.addf %4, %6 : vector<2x128xf32>
    %c0_9 = arith.constant 0 : index
    %c3 = arith.constant 3 : index
    %c0_10 = arith.constant 0 : index
    %c0_11 = arith.constant 0 : index
    %8 = vector.load %arg4[%c0_9, %c3, %c0_10, %c0_11] : memref<1x4x2x128xf32, #tpu.memory_space<vmem>>, vector<1x1x2x128xf32>
    %9 = vector.shape_cast %8 : vector<1x1x2x128xf32> to vector<2x128xf32>
    %10 = arith.addf %7, %9 : vector<2x128xf32>
    %c0_12 = arith.constant 0 : index
    %c0_13 = arith.constant 0 : index
    %c0_14 = arith.constant 0 : index
    %11 = vector.load %arg2[%c0_12, %c0_13, %c0_14] : memref<1x2x128xf32, #tpu.memory_space<vmem>>, vector<1x2x128xf32>
    %12 = vector.shape_cast %11 : vector<1x2x128xf32> to vector<2x128xf32>
    %c0_15 = arith.constant 0 : index
    %c0_16 = arith.constant 0 : index
    %c0_17 = arith.constant 0 : index
    %13 = vector.load %arg3[%c0_15, %c0_16, %c0_17] : memref<1x2x128xf32, #tpu.memory_space<vmem>>, vector<1x2x128xf32>
    %14 = vector.shape_cast %13 : vector<1x2x128xf32> to vector<2x128xf32>
    %15 = arith.subf %12, %14 : vector<2x128xf32>
    %16 = math.absf %15 : vector<2x128xf32>
    %17 = arith.mulf %16, %10 : vector<2x128xf32>
    %cst = arith.constant dense<0.000000e+00> : vector<2xf32>
    %18 = vector.multi_reduction <add>, %17, %cst [1] : vector<2x128xf32> to vector<2xf32>
    %19 = vector.shape_cast %18 : vector<2xf32> to vector<2x1xf32>
    %c0_18 = arith.constant 0 : index
    %c0_19 = arith.constant 0 : index
    %c0_20 = arith.constant 0 : index
    %20 = vector.load %arg5[%c0_18, %c0_19, %c0_20] : memref<1x2x1xf32, #tpu.memory_space<vmem>>, vector<1x2x1xf32>
    %21 = vector.shape_cast %20 : vector<1x2x1xf32> to vector<2x1xf32>
    %22 = vector.shape_cast %19 : vector<2x1xf32> to vector<1x2x1xf32>
    tpu.vector_store %arg5[%c0_18, %c0_19, %c0_20], %22 {strides = array<i32>} : memref<1x2x1xf32, #tpu.memory_space<vmem>>, vector<1x2x1xf32>,
    return
  }
  func.func @transform_0(%arg0: i32, %arg1: i32) -> (i32, i32, i32) {
    %c0_i32 = arith.constant 0 : i32
    %c0_i32_0 = arith.constant 0 : i32
    return %arg0, %arg1, %c0_i32 : i32, i32, i32
  }
  func.func @transform_1(%arg0: i32, %arg1: i32) -> (i32, i32, i32) {
    %c0_i32 = arith.constant 0 : i32
    %c0_i32_0 = arith.constant 0 : i32
    return %arg0, %arg1, %c0_i32 : i32, i32, i32
  }
  func.func @transform_2(%arg0: i32, %arg1: i32) -> (i32, i32, i32, i32) {
    %c0_i32 = arith.constant 0 : i32
    %c0_i32_0 = arith.constant 0 : i32
    %c0_i32_1 = arith.constant 0 : i32
    return %arg0, %c0_i32, %arg1, %c0_i32_0 : i32, i32, i32, i32
  }
  func.func @transform_3(%arg0: i32, %arg1: i32) -> (i32, i32, i32) {
    %c0_i32 = arith.constant 0 : i32
    %c0_i32_0 = arith.constant 0 : i32
    return %arg0, %arg1, %c0_i32 : i32, i32, i32
  }
}

</mosaic_0001>

<bundles_post_ra>
// kernel: tpu_custom_call.1
= control target key start
LH: loop header
LB: loop body
LE: loop exit
PB: predicated region body
PF: predicated region fallthrough
CT: control target
= control target key end

     0   :  { %8 = vsyncpa [#allocation3], 0  ;;  %s910_s0 = inlined_call_operand.hbm [shape: f32[2,2,128], index: 0, kind: input, shape index: {}]   ;;  %s911_s1 = inlined_call_operand.hbm [shape: f32[2,2,128], index: 1, kind: input, shape index: {}]   ;;  %s912_s2 = inlined_call_operand.hbm [shape: f32[2,4,2,128], index: 2, kind: input, shape index: {}]   ;;  %s913_s3 = inlined_call_operand.vmem [shape: f32[2,2,1], index: 3, kind: output, shape index: {}]  }
   0x1   :  { %10 = vsyncpa [#allocation3 + $0x1], 0 }
   0x2   :  { %11 = vsyncpa [#allocation5], 0 }
   0x3   :  { %13 = vsyncpa [#allocation5 + $0x1], 0  ;;  %s700_s12 = smov 0   ;;  %s702_s13 = smov 0  }
   0x4   :  { %s704_s14 = smov 0   ;;  %s706_s15 = smov 0  }
   0x5   :  { %s708_s16 = smov 0   ;;  %s710_s17 = smov 0  }
   0x6 LB: > { %s440_s18 = sadd.s32 4294967295, %s673_s17   ;;  %s31_s19 = sadd.s32 1, %s669_s16  ;;  %s673_s17 = sphi %s710_s17, %s19_s17   ;;  %s669_s16 = sphi %s708_s16, %s925_s16   ;;  %s665_s15 = sphi %s706_s15, %s924_s15   ;;  %s661_s14 = sphi %s704_s14, %s923_s14   ;;  %s657_s13 = sphi %s702_s13, %s922_s13   ;;  %s653_s12 = sphi %s700_s12, %s921_s12  }
   0x7   : > { %p33_p0 = scmp.ge.s32.totalorder %s31_s19, 2  ;;  %s40_s20 = sadd.s32 1, %s661_s14 }
   0x8   : > { %p47_p1 = scmp.ne.s32.totalorder %s661_s14, %s657_s13  ;;  %p48_p2 = scmp.eq.s32.totalorder %s673_s17, 0 }
   0x9   : > { %s927_s19 = smov (%p33_p0, %s31_s19), 0  ;;  %p53_p4 = scmp.ne.s32.totalorder %s657_s13, %s653_s12 }
   0xa   : > { %p49_p3 = por %p48_p2, %p47_p1  ;;  %s35_s21 = ssub.s32 %s669_s16, %s927_s19 }
   0xb   : > { %p54_p5 = scmp.eq.s32.totalorder %s440_s18, 0  ;;  %p38_p6 = scmp.eq.s32.totalorder %s35_s21, 0 }
   0xc   : > { %p478_p8 = scmp.lt.s32.totalorder %s673_s17, 2  ;;  %s750_s24 = sand.u32 1, %s661_s14  }
   0xd   : > { %p741_p7 = por %p54_p5, %p53_p4  ;;  %s445_s25 = sshll.u32 %s669_s16, 5 }
   0xe   : > { %s747_s23 = scalar_select %p38_p6, %s661_s14, %s40_s20  }
   0xf   : > { %s915_s22 = scalar_select %p741_p7, 1, 0 }
  0x10   : > { %s444_s26 = sshll.u32 %s750_s24, 1  ;;  %p754_p9 = pnand %p478_p8, %p49_p3 }
  0x11   : > { %s180_s28 = sand.u32 1, %s673_s17   ;;  %s764_s4 = scalar_lea.hbm %s911_s1, %s445_s25 }
  0x12   : > { %s184_s5 = scalar_lea.vmem [#allocation4], %s444_s26  ;;  %s448_s7 = sshll.u32 %s750_s24, 3 }
  0x13   : > { %s192_s6 = sshll.u32 %s184_s5, 4  ;;  %s771_s8 = scalar_lea.sflag [#allocation5], %s180_s28  ;;  %s768_s6 = int_to_ptr.vmem [resolvable:$true] %s192_s6 }
  0x14   : > { %s529_s9 = scalar_lea.hbm %s764_s4, 32  ;;  %p777_p11 = pneg %p754_p9 }
  0x15   : > { %p530_p10 = scmp.ne.s32.totalorder %s764_s4, %s529_s9  ;;  %s534_s20 = scalar_lea.hbm %s911_s1, 64 }
  0x16   : > { %p535_p0 = scmp.lt.u32.totalorder %s764_s4, %s911_s1  ;;  %p536_p1 = scmp.lt.u32.totalorder %s534_s20, %s529_s9 }
  0x17   : > { %p532_p12 = pnand %p777_p11, %p530_p10  ;;  %p538_p3 = scmp.lt.u32.totalorder %s529_s9, %s764_s4 }
  0x18   : > { %p537_p2 = por %p536_p1, %p535_p0 }
  0x19   : > { %p533_p13 = pneg %p532_p12 }
  0x1a   : > { %p539_p4 = por %p538_p3, %p537_p2 }
  0x1c   : > { %p540_p5 = pnand %p539_p4, %p533_p13 }
  0x1e   : > { %543 = shalt.err (!%p540_p5)
}
  0x1f   : > { %s544_s28 = scalar_lea.vmem %s768_s6, 32  ;;  %s675_s30 = smov [#allocation4]  }
  0x20   : > { %p545_p6 = scmp.ne.s32.totalorder %s768_s6, %s544_s28  ;;  %s549_s5 = sshll.u32 %s675_s30, 4  ;;  %s550_s5 = int_to_ptr.vmem [resolvable:$false] %s549_s5 }
  0x21   : > { %s551_s11 = scalar_lea.vmem %s550_s5, 64  ;;  %p552_p12 = scmp.lt.s32.totalorder %s768_s6, %s550_s5 }
  0x22   : > { %p547_p8 = pnand %p545_p6, %p777_p11  ;;  %p553_p7 = scmp.lt.s32.totalorder %s551_s11, %s544_s28 }
  0x24   : > { %p548_p10 = pneg %p547_p8  ;;  %p554_p0 = por %p553_p7, %p552_p12 }
  0x26   : > { %p555_p1 = pnand %p554_p0, %p548_p10 }
  0x28   : > { %558 = shalt.err (!%p555_p1)
}
  0x29   : > { %474 = dma.hbm_to_vmem [thread:$0]  (!%p754_p9), %s764_s4, 32, %s768_s6, %s771_s8  }
  0x2a   : > { %p451_p13 = scmp.ge.s32.totalorder %s673_s17, 1  ;;  %s203_s9 = scalar_lea.vmem [#allocation6], %s448_s7 }
  0x2b   : > { %s211_s12 = sshll.u32 %s203_s9, 4  ;;  %p219_p7 = scmp.lt.s32.totalorder %s673_s17, 3  ;;  %s805_s12 = int_to_ptr.vmem [resolvable:$true] %s211_s12 }
  0x2c   : > { %s816_s28 = scalar_lea.hbm %s910_s0, %s445_s25  ;;  %s165_s4 = scalar_lea.vmem [#allocation2], %s444_s26 }
  0x2d   : > { %p807_p2 = pnand %p451_p13, %p219_p7  ;;  %s173_s6 = sshll.u32 %s165_s4, 4  ;;  %s820_s6 = int_to_ptr.vmem [resolvable:$true] %s173_s6 }
  0x2e   : > { %s461_s7 = sshll.u32 %s669_s16, 7  ;;  %s162_s30 = scalar_lea.sflag [#allocation3], %s750_s24 }
  0x2f   : > { %s918_s20 = scalar_select %p807_p2, 1, 0 }
  0x30   : > { %s559_s5 = scalar_lea.hbm %s816_s28, 32  ;;  %s564_s25 = scalar_lea.hbm %s910_s0, 64 }
  0x31   : > { %p560_p3 = scmp.ne.s32.totalorder %s816_s28, %s559_s5  ;;  %p565_p6 = scmp.lt.u32.totalorder %s816_s28, %s910_s0 }
  0x32   : > { %p566_p8 = scmp.lt.u32.totalorder %s564_s25, %s559_s5  ;;  %p568_p12 = scmp.lt.u32.totalorder %s559_s5, %s816_s28 }
  0x33   : > { %p562_p4 = pnand %p560_p3, %p777_p11 }
  0x34   : > { %p567_p10 = por %p566_p8, %p565_p6 }
  0x35   : > { %p563_p5 = pneg %p562_p4 }
  0x36   : > { %p569_p0 = por %p568_p12, %p567_p10 }
  0x38   : > { %p570_p1 = pnand %p569_p0, %p563_p5 }
  0x3a   : > { %573 = shalt.err (!%p570_p1)
}
  0x3b   : > { %s574_s24 = scalar_lea.vmem %s820_s6, 32  ;;  %s676_s26 = smov [#allocation2]  }
  0x3c   : > { %p575_p13 = scmp.ne.s32.totalorder %s820_s6, %s574_s24  ;;  %s579_s4 = sshll.u32 %s676_s26, 4  ;;  %s580_s4 = int_to_ptr.vmem [resolvable:$false] %s579_s4 }
  0x3d   : > { %s581_s11 = scalar_lea.vmem %s580_s4, 64  ;;  %p582_p4 = scmp.lt.s32.totalorder %s820_s6, %s580_s4 }
  0x3e   : > { %p577_p7 = pnand %p575_p13, %p777_p11  ;;  %p583_p2 = scmp.lt.s32.totalorder %s581_s11, %s574_s24 }
  0x40   : > { %p578_p3 = pneg %p577_p7  ;;  %p584_p6 = por %p583_p2, %p582_p4 }
  0x42   : > { %p585_p8 = pnand %p584_p6, %p578_p3 }
  0x44   : > { %588 = shalt.err (!%p585_p8)
}
  0x45   : > { %471 = dma.hbm_to_vmem [thread:$0]  (!%p754_p9), %s816_s28, 32, %s820_s6, %s162_s30  }
  0x46   : > { %s850_s25 = scalar_lea.hbm %s912_s2, %s461_s7  ;;  %s594_s26 = scalar_lea.hbm %s912_s2, 256 }
  0x47   : > { %s589_s21 = scalar_lea.hbm %s850_s25, 128  ;;  %p595_p12 = scmp.lt.u32.totalorder %s850_s25, %s912_s2 }
  0x48   : > { %p590_p2 = scmp.ne.s32.totalorder %s850_s25, %s589_s21  ;;  %p596_p0 = scmp.lt.u32.totalorder %s594_s26, %s589_s21 }
  0x49   : > { %p598_p13 = scmp.lt.u32.totalorder %s589_s21, %s850_s25 }
  0x4a   : > { %p592_p5 = pnand %p590_p2, %p777_p11  ;;  %p597_p1 = por %p596_p0, %p595_p12 }
  0x4c   : > { %p593_p10 = pneg %p592_p5  ;;  %p599_p7 = por %p598_p13, %p597_p1 }
  0x4e   : > { %p600_p3 = pnand %p599_p7, %p593_p10 }
  0x50   : > { %603 = shalt.err (!%p600_p3)
}
  0x51   : > { %s604_s7 = scalar_lea.vmem %s805_s12, 128  ;;  %s677_s30 = smov [#allocation6]  }
  0x52   : > { %p605_p4 = scmp.ne.s32.totalorder %s805_s12, %s604_s7  ;;  %s609_s4 = sshll.u32 %s677_s30, 4  ;;  %s610_s4 = int_to_ptr.vmem [resolvable:$false] %s609_s4 }
  0x53   : > { %s611_s11 = scalar_lea.vmem %s610_s4, 256  ;;  %p612_p2 = scmp.lt.s32.totalorder %s805_s12, %s610_s4 }
  0x54   : > { %p607_p6 = pnand %p605_p4, %p777_p11  ;;  %p613_p5 = scmp.lt.s32.totalorder %s611_s11, %s604_s7 }
  0x56   : > { %p608_p8 = pneg %p607_p6  ;;  %p614_p12 = por %p613_p5, %p612_p2 }
  0x58   : > { %p615_p0 = pnand %p614_p12, %p608_p8 }
  0x5a   : > { %618 = shalt.err (!%p615_p0)
}
  0x5b   : > { %s678_s5 = smov 32   ;;  %s679_s9 = smov 2  }
  0x5c   : > { %477 = dma.hbm_to_vmem [thread:$0]  (!%p754_p9), %s850_s25, 128, %s805_s12, %s771_s8, %s678_s5, %s678_s5, %s679_s9  }
  0x5d   : > { %p919_p11 = scmp.ne.s32.totalorder %s918_s20, 0 }
  0x5e   : > { %s225_s10 = sand.u32 (!%p919_p11), 1, %s657_s13   ;;  %p920_p10 = scmp.ne.s32.totalorder (!%p919_p11), %s915_s22, 0 }
  0x5f   : > { %223 = sbr.rel (%p919_p11) target bundleno = 261 (0x105), region = 32  ;;  %s452_s21 = sshll.u32 (!%p919_p11), %s225_s10, 1 }
  0x60   : > { %s226_s29 = scalar_lea.sflag (!%p919_p11), [#allocation3], %s225_s10  ;;  %s229_s24 = scalar_lea.vmem (!%p919_p11), [#allocation2], %s452_s21 }
  0x66   : > { %644 = dma.done.wait (%p920_p10), %s226_s29, 32  }
  0x67   : > { %646 = vsyncadd (%p920_p10), %s226_s29, 4294967264  ;;  %s234_s26 = sand.u32 1, %s440_s18   ;;  %s238_s8 = scalar_lea.vmem [#allocation4], %s452_s21 }
  0x68   : > { %s235_s27 = scalar_lea.sflag [#allocation5], %s234_s26 }
  0x69   : > { %648 = dma.done.wait (%p920_p10), %s235_s27, 160  }
  0x6a   : > { %650 = vsyncadd (%p920_p10), %s235_s27, 4294967136  ;;  %s454_s12 = sshll.u32 %s225_s10, 3  ;;  %v299_v4 = vld [vmem:[%s229_s24] sm:$0x3]  ;;  %v300_v5 = vld [vmem:[%s238_s8] sm:$0x3] }
  0x6b   : > { %s247_s20 = scalar_lea.vmem [#allocation6], %s454_s12  ;;  %v301_v7 = vsub.f32 %v299_v4, %v300_v5  ;;  %vm304_vm0 = vcmask 1041408   ;;  %p282_p9 = scmp.lt.s32.totalorder %s665_s15, 1  ;;  %vm308_vm1 = vcmask 1024  }
  0x6c   : > { %v289_v0 = vld [vmem:[%s247_s20] sm:$0x3]  ;;  %v456_v1 = vld [vmem:[%s247_s20 + $0x2] sm:$0x3]  ;;  %v457_v2 = vld [vmem:[%s247_s20 + $0x4] sm:$0x3] }
  0x6d   : > { %v292_v3 = vadd.f32 %v456_v1, %v289_v0  ;;  %v458_v6 = vld [vmem:[%s247_s20 + $0x6] sm:$0x3]  ;;  %v302_v9 = vand.u32 2147483647, %v301_v7  ;;  %s929_s15 = smov (!%p282_p9, %s665_s15), 1 }
  0x6e   : > { %s455_s18 = sshll.u32 %s929_s15, 1 }
  0x6f   : > { %v295_v8 = vadd.f32 %v457_v2, %v292_v3  ;;  %s288_s28 = scalar_lea.vmem %s913_s3, %s455_s18 }
  0x71   : > { %v298_v10 = vadd.f32 %v458_v6, %v295_v8 }
  0x73   : > { %v303_v11 = vmul.f32 %v302_v9, %v298_v10 }
  0x75   : > { %v305_v12 = vsel %vm304_vm0, %v303_v11, 0.0 }
  0x76   : > { %306 = vadd.xlane.f32.xlu0 %v305_v12 }
 0x103   : > { %v307_v13 = vpop.xlane.xlu0 %306 }
 0x104   : > { %309 = vst.msk [vmem:[%s288_s28] sm:$0x3] %vm308_vm1, %v307_v13 }
 0x105 PF: > { %s19_s17 = sadd.s32 1, %s673_s17   ;;  %s921_s12 = smov %s657_s13 }
 0x106   : > { %p16_p1 = scmp.ge.s32.totalorder %s19_s17, 4   ;;  %s922_s13 = smov %s661_s14 }
 0x107   : > { %s923_s14 = smov %s747_s23  ;;  %s924_s15 = smov %s669_s16 }
 0x108   : > { %s925_s16 = smov %s927_s19  ;;  %18 = sbr.rel (!%p16_p1) target bundleno = 6 (0x6), region = 99 }
 0x10f   :  { %335 = vsyncpa [#allocation3], 1 }
 0x110   :  { %337 = vsyncpa [#allocation3 + $0x1], 1 }
 0x111   :  { %338 = vsyncpa [#allocation5], 1 }
 0x112   :  { %340 = vsyncpa [#allocation5 + $0x1], 1 }

</bundles_post_ra>
